<compile_context>
chip_gen: v7x
topology: tpu7x:2x2x1
jax: 0.10.0
libtpu: 0.0.40
codegen_flags: <defaults>
</compile_context>

<pallas_src>
import functools

import jax
import jax.numpy as jnp
from jax import lax
from jax.experimental import pallas as pl
from jax.experimental.pallas import tpu as pltpu


def cls_kernel(x_ref, w_ref, b_ref, o_ref):
    # (TB, K) @ (K, C_pad) -> (TB, C_pad); bf16 operands, f32 MXU accumulate.
    logits = lax.dot_general(
        x_ref[...], w_ref[...],
        dimension_numbers=(((1,), (0,)), ((), ())),
        preferred_element_type=jnp.float32,
    ) + b_ref[...]

    # Numerically-stable softmax over the class axis (dim=1), all in f32.
    # Padded classes carry a -1e30 bias, so exp underflows to exactly 0: they
    # perturb neither the row max nor the denominator.
    m = jnp.max(logits, axis=1, keepdims=True)
    e = jnp.exp(logits - m)
    denom = jnp.sum(e, axis=1, keepdims=True)
    # Exact division (matches PyTorch softmax; approx vrcp was the accuracy bug).
    o_ref[...] = (e / denom).astype(o_ref.dtype)


def prepare_cls_params(weight, bias, compute_dtype=jnp.bfloat16):
    """One-time (init-time) pad / transpose / cast of the Linear parameters.

    weight: (classes, 640) f32, bias: (classes,) f32
      -> w_p: (640, C_pad) compute_dtype (lane-dense, pre-transposed)
         b_p: (1, C_pad) f32, padded columns set to -1e30.
    """
    C, K = weight.shape
    C_pad = ((C + 127) // 128) * 128            # lane-dense class axis (keep at 128)
    w_p = jnp.pad(weight, ((0, C_pad - C), (0, 0))).T.astype(compute_dtype)
    b_p = jnp.pad(bias.astype(jnp.float32), (0, C_pad - C),
                  constant_values=-1e30).reshape(1, C_pad)
    return w_p, b_p


@functools.partial(jax.jit, static_argnames=("classes", "tb"))
def cls_forward(x, w_p, b_p, *, classes, tb=1024):
    """x: (B, 640); w_p/b_p from prepare_cls_params. Returns (B, classes) f32."""
    B, K = x.shape
    C_pad = w_p.shape[1]

    # bf16 activations halve the dominant HBM read; matmul accumulates in f32
    # and the softmax is f32, so v5e's lack of bf16 VPU/EUP is irrelevant.
    x_c = x.astype(w_p.dtype)

    # Batch tile: multiple of 8 (sublane). For B > 8 force at least 2 grid
    # steps so both v7x TensorCores get work (weight/bias stay resident; the
    # only cost is one extra tiny weight DMA).
    if B > 8:
        TB = min(tb, ((-(-B // 2) + 7) // 8) * 8)
    else:
        TB = min(tb, ((B + 7) // 8) * 8)

    out = pl.pallas_call(
        cls_kernel,
        out_shape=jax.ShapeDtypeStruct((B, C_pad), jnp.float32),
        # No padded copy of x: a non-divisible grid is fine because softmax is
        # row-independent (garbage rows in the final partial tile cannot
        # contaminate valid rows) and out-of-bounds output writes are dropped.
        grid=(pl.cdiv(B, TB),),
        in_specs=[
            pl.BlockSpec((TB, K), lambda i: (i, 0)),       # x: tiled over batch
            pl.BlockSpec((K, C_pad), lambda i: (0, 0)),    # weight: resident
            pl.BlockSpec((1, C_pad), lambda i: (0, 0)),    # bias: resident
        ],
        out_specs=pl.BlockSpec((TB, C_pad), lambda i: (i, 0)),
        compiler_params=pltpu.CompilerParams(
            dimension_semantics=("parallel",),             # megacore sharding
            vmem_limit_bytes=32 * 1024 * 1024,
        ),
    )(x_c, w_p, b_p)
    return out[:, :classes]


if __name__ == "__main__":
    key = jax.random.PRNGKey(0)
    kx, kw, kb = jax.random.split(key, 3)

    B, IN, CLASSES = 8, 640, 5
    # Deterministic "PyTorch-like" Linear init: U(-1/sqrt(in), 1/sqrt(in))
    bound = 1.0 / (IN ** 0.5)
    weight = jax.random.uniform(kw, (CLASSES, IN), jnp.float32, -bound, bound)
    bias = jax.random.uniform(kb, (CLASSES,), jnp.float32, -bound, bound)
    x = jax.random.normal(kx, (B, IN), jnp.float32)

    w_p, b_p = prepare_cls_params(weight, bias)
    out = cls_forward(x, w_p, b_p, classes=CLASSES)
    out = jax.block_until_ready(out)

    # Reference with the same bf16 input/weight cast but f32 math (matches the
    # kernel's bf16-operand / f32-accumulate MXU path).
    x_r = x.astype(jnp.bfloat16).astype(jnp.float32)
    w_r = weight.astype(jnp.bfloat16).astype(jnp.float32)
    ref = jax.nn.softmax(x_r @ w_r.T + bias, axis=1)

    assert out.shape == (B, CLASSES), out.shape
    err = float(jnp.max(jnp.abs(out - ref)))
    assert jnp.allclose(out, ref, atol=1e-4, rtol=1e-4), err

    print("KERNEL_OK")
</pallas_src>

<mosaic_0001>
module attributes {stable_mosaic.version = 11 : i64} {
  func.func @cls_kernel(%arg0: i32, %arg1: memref<8x640xbf16, #tpu.memory_space<vmem>>, %arg2: memref<640x128xbf16, #tpu.memory_space<vmem>>, %arg3: memref<1x128xf32, #tpu.memory_space<vmem>>, %arg4: memref<8x128xf32, #tpu.memory_space<vmem>>) attributes {dimension_semantics = [#tpu.dimension_semantics<parallel>], iteration_bounds = array<i64: 1>, scalar_prefetch = 0 : i64, scratch_operands = 0 : i64, tpu.core_type = #tpu.core_type<tc>, window_params = [{transform_indices = @transform_0, window_bounds = array<i64: 8, 640>}, {pipeline_mode = #tpu.pipeline_mode<synchronous>, transform_indices = @transform_1, window_bounds = array<i64: 640, 128>}, {pipeline_mode = #tpu.pipeline_mode<synchronous>, transform_indices = @transform_2, window_bounds = array<i64: 1, 128>}, {transform_indices = @transform_3, window_bounds = array<i64: 8, 128>}]} {
    %c0 = arith.constant 0 : index
    %c0_0 = arith.constant 0 : index
    %0 = vector.load %arg1[%c0, %c0_0] : memref<8x640xbf16, #tpu.memory_space<vmem>>, vector<8x640xbf16>
    %c0_1 = arith.constant 0 : index
    %c0_2 = arith.constant 0 : index
    %1 = vector.load %arg2[%c0_1, %c0_2] : memref<640x128xbf16, #tpu.memory_space<vmem>>, vector<640x128xbf16>
    %cst = arith.constant dense<0.000000e+00> : vector<8x128xf32>
    %2 = tpu.matmul %0, %1, %cst {dimension_numbers = #tpu.dot_dimension_numbers<[1], [0], [0], [1], [0, 0, 1, 1], [], []>} : vector<8x640xbf16>, vector<640x128xbf16>, vector<8x128xf32> -> vector<8x128xf32>
    %c0_3 = arith.constant 0 : index
    %c0_4 = arith.constant 0 : index
    %3 = vector.load %arg3[%c0_3, %c0_4] : memref<1x128xf32, #tpu.memory_space<vmem>>, vector<1x128xf32>
    %4 = vector.broadcast %3 : vector<1x128xf32> to vector<8x128xf32>
    %5 = arith.addf %2, %4 : vector<8x128xf32>
    %cst_5 = arith.constant dense<0xFF800000> : vector<8xf32>
    %6 = vector.multi_reduction <maximumf>, %5, %cst_5 [1] : vector<8x128xf32> to vector<8xf32>
    %7 = vector.shape_cast %6 : vector<8xf32> to vector<8x1xf32>
    %8 = vector.broadcast %7 : vector<8x1xf32> to vector<8x128xf32>
    %9 = arith.subf %5, %8 : vector<8x128xf32>
    %10 = math.exp %9 : vector<8x128xf32>
    %cst_6 = arith.constant dense<0.000000e+00> : vector<8xf32>
    %11 = vector.multi_reduction <add>, %10, %cst_6 [1] : vector<8x128xf32> to vector<8xf32>
    %12 = vector.shape_cast %11 : vector<8xf32> to vector<8x1xf32>
    %13 = vector.broadcast %12 : vector<8x1xf32> to vector<8x128xf32>
    %14 = arith.divf %10, %13 : vector<8x128xf32>
    %c0_7 = arith.constant 0 : index
    %c0_8 = arith.constant 0 : index
    %15 = vector.load %arg4[%c0_7, %c0_8] : memref<8x128xf32, #tpu.memory_space<vmem>>, vector<8x128xf32>
    tpu.vector_store %arg4[%c0_7, %c0_8], %14 {strides = array<i32>} : memref<8x128xf32, #tpu.memory_space<vmem>>, vector<8x128xf32>,
    return
  }
  func.func @transform_0(%arg0: i32) -> (i32, i32) {
    %c0_i32 = arith.constant 0 : i32
    %c0_i32_0 = arith.constant 0 : i32
    return %arg0, %c0_i32 : i32, i32
  }
  func.func @transform_1(%arg0: i32) -> (i32, i32) {
    %c0_i32 = arith.constant 0 : i32
    %c0_i32_0 = arith.constant 0 : i32
    %c0_i32_1 = arith.constant 0 : i32
    return %c0_i32, %c0_i32_0 : i32, i32
  }
  func.func @transform_2(%arg0: i32) -> (i32, i32) {
    %c0_i32 = arith.constant 0 : i32
    %c0_i32_0 = arith.constant 0 : i32
    %c0_i32_1 = arith.constant 0 : i32
    return %c0_i32, %c0_i32_0 : i32, i32
  }
  func.func @transform_3(%arg0: i32) -> (i32, i32) {
    %c0_i32 = arith.constant 0 : i32
    %c0_i32_0 = arith.constant 0 : i32
    return %arg0, %c0_i32 : i32, i32
  }
}

</mosaic_0001>

<bundles_post_ra>
// kernel: cls_forward.1
= control target key start
LH: loop header
LB: loop body
LE: loop exit
PB: predicated region body
PF: predicated region fallthrough
CT: control target
= control target key end

     0   :  { %8 = vsyncpa [#allocation3], 0  ;;  %s807_s0 = inlined_call_operand.vmem [shape: bf16[8,640], index: 0, kind: input, shape index: {}]   ;;  %s808_s1 = inlined_call_operand.hbm [shape: bf16[640,128], index: 1, kind: input, shape index: {}]   ;;  %s809_s2 = inlined_call_operand.vmem [shape: f32[1,128], index: 2, kind: input, shape index: {}]   ;;  %s810_s3 = inlined_call_operand.hbm [shape: f32[8,128], index: 3, kind: output, shape index: {}]  }
   0x1   :  { %9 = vsyncpa [#allocation4], 0  ;;  %s745_s12 = smov [#allocation2]   ;;  %s697_s16 = scalar_lea.hbm %s808_s1, 5120 }
   0x2   :  { %s17_s13 = sshll.u32 %s745_s12, 4  ;;  %p698_p0 = scmp.ne.s32.totalorder %s808_s1, %s697_s16  ;;  %s18_s13 = int_to_ptr.vmem [resolvable:$true] %s17_s13 }
   0x3   :  { %p701_p1 = scmp.lt.u32.totalorder %s697_s16, %s808_s1 }
   0x5   :  { %p703_p2 = pnand %p701_p1, %p698_p0 }
   0x7   :  { %706 = shalt.err (!%p703_p2)
}
   0x8   :  { %s707_s21 = scalar_lea.vmem %s18_s13, 5120  ;;  %p712_p4 = scmp.lt.s32.totalorder %s18_s13, %s18_s13 }
   0x9   :  { %p708_p3 = scmp.ne.s32.totalorder %s18_s13, %s707_s21  ;;  %p713_p5 = scmp.lt.s32.totalorder %s707_s21, %s707_s21 }
   0xb   :  { %p714_p6 = por %p713_p5, %p712_p4 }
   0xd   :  { %p715_p7 = pnand %p714_p6, %p708_p3 }
   0xf   :  { %718 = shalt.err (!%p715_p7)
}
  0x10   :  { %s746_s22 = smov 64   ;;  %s747_s23 = smov 4  }
  0x11   :  { %23 = dma.hbm_to_vmem [thread:$0]  %s808_s1, 5120, %s18_s13, [#allocation3], %s746_s22, %s746_s22, %s747_s23  }
  0x12   :  { %741 = dma.done.wait [#allocation3], 5120  }
  0x13   :  { %742 = vsyncadd [#allocation3], 4294962176  ;;  %v648_v0 = vld [vmem:[#allocation2 + $0x40] sm:$0xff]   ;;  %v652_v4 = vld [vmem:[#allocation2 + $0x48] sm:$0xff]   ;;  %v748_v35 = vmov 0.0   ;;  %vm749_vm0 = vmmov 0  }
  0x14   :  { %v649_v1 = vld [vmem:[#allocation2] sm:$0xff]   ;;  %569 = vmatprep.subr.bf16.mxu0 %v648_v0  ;;  %v653_v5 = vld [vmem:[#allocation2 + $0x8] sm:$0xff]   ;;  %v656_v8 = vld [vmem:[#allocation2 + $0x50] sm:$0xff]  }
  0x15   :  { %v650_v2 = vld [vmem:[#allocation2 + $0xc0] sm:$0xff]   ;;  %570 = vmatpush3.bf16.msra.mxu0 %v649_v1  ;;  %v654_v6 = vld [vmem:[#allocation2 + $0xc8] sm:$0xff]   ;;  %v657_v9 = vld [vmem:[#allocation2 + $0x10] sm:$0xff]  }
  0x16   :  { %v651_v3 = vld [vmem:[#allocation2 + $0x80] sm:$0xff]   ;;  %591 = vmatprep.subr.bf16.mxu1 %v650_v2  ;;  %571 = vmatprep.subr.bf16.mxu0 %v652_v4  ;;  %v655_v7 = vld [vmem:[#allocation2 + $0x88] sm:$0xff]   ;;  %v658_v10 = vld [vmem:[#allocation2 + $0xd0] sm:$0xff]  }
  0x17   :  { %592 = vmatpush3.bf16.msra.mxu1 %v651_v3  ;;  %v659_v11 = vld [vmem:[#allocation2 + $0x90] sm:$0xff]   ;;  %v660_v12 = vld [vmem:[#allocation2 + $0x58] sm:$0xff]   ;;  %v664_v16 = vld [vmem:[#allocation2 + $0x60] sm:$0xff]  }
  0x18   :  { %593 = vmatprep.subr.bf16.mxu1 %v654_v6  ;;  %v661_v13 = vld [vmem:[#allocation2 + $0x18] sm:$0xff]   ;;  %v665_v17 = vld [vmem:[#allocation2 + $0x20] sm:$0xff]   ;;  %v668_v20 = vld [vmem:[#allocation2 + $0x68] sm:$0xff]  }
  0x19   :  { %572 = vmatpush3.bf16.msra.mxu0 %v653_v5  ;;  %v662_v14 = vld [vmem:[#allocation2 + $0xd8] sm:$0xff]   ;;  %v666_v18 = vld [vmem:[#allocation2 + $0xe0] sm:$0xff]   ;;  %v669_v21 = vld [vmem:[#allocation2 + $0x28] sm:$0xff]  }
  0x1a   :  { %573 = vmatprep.subr.bf16.mxu0 %v656_v8  ;;  %v663_v15 = vld [vmem:[#allocation2 + $0x98] sm:$0xff]   ;;  %v667_v19 = vld [vmem:[#allocation2 + $0xa0] sm:$0xff]   ;;  %v670_v22 = vld [vmem:[#allocation2 + $0xe8] sm:$0xff]  }
  0x1b   :  { %594 = vmatpush3.bf16.msra.mxu1 %v655_v7  ;;  %v671_v23 = vld [vmem:[#allocation2 + $0xa8] sm:$0xff]   ;;  %v672_v24 = vld [vmem:[#allocation2 + $0x70] sm:$0xff]   ;;  %v676_v28 = vld [vmem:[#allocation2 + $0x78] sm:$0xff]  }
  0x1c   :  { %595 = vmatprep.subr.bf16.mxu1 %v658_v10  ;;  %v673_v25 = vld [vmem:[#allocation2 + $0x30] sm:$0xff]   ;;  %v677_v29 = vld [vmem:[#allocation2 + $0x38] sm:$0xff]   ;;  %v30_v31 = vld [vmem:[%s807_s0] sm:$0xff] }
  0x1d   :  { %574 = vmatpush3.bf16.msra.mxu0 %v657_v9  ;;  %v674_v26 = vld [vmem:[#allocation2 + $0xf0] sm:$0xff]   ;;  %v678_v30 = vld [vmem:[#allocation2 + $0xf8] sm:$0xff]   ;;  %v524_v32 = vcombine.low %v30_v31, %v30_v31  ;;  %v525_v33 = vcombine.high %v30_v31, %v30_v31  ;;  %v31_v36 = vld [vmem:[%s807_s0 + $0x8] sm:$0xff] }
  0x1e   :  { %575 = vmatprep.subr.bf16.mxu0 %v660_v12  ;;  %v675_v27 = vld [vmem:[#allocation2 + $0xb0] sm:$0xff]   ;;  %v681_v34 = vld [vmem:[#allocation2 + $0xb8] sm:$0xff]   ;;  %v526_v37 = vcombine.low %v31_v36, %v31_v36  ;;  %v527_v38 = vcombine.high %v31_v36, %v31_v36  ;;  %v684_v39 = vld [vmem:[#allocation2 + $0x100] sm:$0xff]  }
  0x1f   :  { %596 = vmatpush3.bf16.msra.mxu1 %v659_v11  ;;  %410 = vmatprep.mubr.bf16.mxu0 %v525_v33  ;;  %v685_v40 = vld [vmem:[#allocation2 + $0x108] sm:$0xff]   ;;  %v686_v41 = vld [vmem:[#allocation2 + $0x110] sm:$0xff]   ;;  %v687_v42 = vld [vmem:[#allocation2 + $0x118] sm:$0xff]  }
  0x20   :  { %597 = vmatprep.subr.bf16.mxu1 %v662_v14  ;;  %450 = vmatprep.mubr.bf16.mxu1 %v527_v38  ;;  %v688_v43 = vld [vmem:[#allocation2 + $0x120] sm:$0xff]   ;;  %v689_v44 = vld [vmem:[#allocation2 + $0x128] sm:$0xff]   ;;  %v690_v45 = vld [vmem:[#allocation2 + $0x130] sm:$0xff]  }
  0x21   :  { %576 = vmatpush3.bf16.msra.mxu0 %v661_v13  ;;  %v691_v46 = vld [vmem:[#allocation2 + $0x138] sm:$0xff]   ;;  %v692_v47 = vld [vmem:[%s807_s0 + $0x10] ss:$0 sps:$4 sm:$0xff]   ;;  %v523_v49 = vld [vmem:[%s809_s2] ss:$0 sm:$0xff]  ;;  %s750_s0 = smov [#allocation5]  }
  0x22   :  { %577 = vmatprep.subr.bf16.mxu0 %v664_v16  ;;  %s514_s2 = sshll.u32 %s750_s0, 4  ;;  %s515_s2 = int_to_ptr.vmem [resolvable:$true] %s514_s2 }
  0x23   :  { %598 = vmatpush3.bf16.msra.mxu1 %v663_v15  ;;  %s719_s6 = scalar_lea.vmem %s515_s2, 128  ;;  %p724_p9 = scmp.lt.s32.totalorder %s515_s2, %s515_s2 }
  0x24   :  { %599 = vmatprep.subr.bf16.mxu1 %v666_v18  ;;  %p720_p8 = scmp.ne.s32.totalorder %s515_s2, %s719_s6  ;;  %p725_p10 = scmp.lt.s32.totalorder %s719_s6, %s719_s6 }
  0x25   :  { %578 = vmatpush3.bf16.msra.mxu0 %v665_v17 }
  0x26   :  { %579 = vmatprep.subr.bf16.mxu0 %v668_v20  ;;  %p726_p11 = por %p725_p10, %p724_p9 }
  0x27   :  { %600 = vmatpush3.bf16.msra.mxu1 %v667_v19 }
  0x28   :  { %601 = vmatprep.subr.bf16.mxu1 %v670_v22  ;;  %p727_p12 = pnand %p726_p11, %p720_p8 }
  0x29   :  { %580 = vmatpush3.bf16.msra.mxu0 %v669_v21 }
  0x2a   :  { %581 = vmatprep.subr.bf16.mxu0 %v672_v24 }
  0x2b   :  { %602 = vmatpush3.bf16.msra.mxu1 %v671_v23 }
  0x2c   :  { %603 = vmatprep.subr.bf16.mxu1 %v674_v26 }
  0x2d   :  { %582 = vmatpush3.bf16.msra.mxu0 %v673_v25 }
  0x2e   :  { %583 = vmatprep.subr.bf16.mxu0 %v676_v28 }
  0x2f   :  { %604 = vmatpush3.bf16.msra.mxu1 %v675_v27 }
  0x30   :  { %605 = vmatprep.subr.bf16.mxu1 %v678_v30 }
  0x31   :  { %584 = vmatpush3.bf16.msra.mxu0 %v677_v29 }
  0x32   :  { %622 = vmatprep.subr.bf16.mxu0 %v748_v35 }
  0x33   :  { %606 = vmatpush3.bf16.msra.mxu1 %v681_v34 }
  0x34   :  { %411 = vmatmul.mubr.bf16.vlgmr.msra.gmra.mrb[0].mxu0 %v524_v32 }
  0x35   :  { %623 = vmatpush3.bf16.msra.mxu0 %v684_v39  ;;  %638 = vmatprep.mubr.msk.bf16.mxu0 %vm749_vm0, %v748_v35 }
  0x36   :  { %451 = vmatmul.mubr.bf16.vlgmr.msra.gmra.mrb[0].mxu1 %v526_v37  ;;  %624 = vmatprep.subr.bf16.mxu0 %v748_v35 }
  0x39   :  { %625 = vmatpush3.bf16.msra.mxu0 %v685_v40 }
  0x3a   :  { %626 = vmatprep.subr.bf16.mxu0 %v748_v35 }
  0x3d   :  { %627 = vmatpush3.bf16.msra.mxu0 %v686_v41 }
  0x3e   :  { %628 = vmatprep.subr.bf16.mxu0 %v748_v35 }
  0x41   :  { %629 = vmatpush3.bf16.msra.mxu0 %v687_v42 }
  0x42   :  { %630 = vmatprep.subr.bf16.mxu0 %v748_v35 }
  0x45   :  { %631 = vmatpush3.bf16.msra.mxu0 %v688_v43 }
  0x46   :  { %632 = vmatprep.subr.bf16.mxu0 %v748_v35 }
  0x49   :  { %633 = vmatpush3.bf16.msra.mxu0 %v689_v44 }
  0x4a   :  { %634 = vmatprep.subr.bf16.mxu0 %v748_v35 }
  0x4d   :  { %635 = vmatpush3.bf16.msra.mxu0 %v690_v45 }
  0x4e   :  { %636 = vmatprep.subr.bf16.mxu0 %v748_v35 }
  0x51   :  { %637 = vmatpush3.bf16.msra.mxu0 %v691_v46 }
  0x54   :  { %639 = vmatmul.mubr.bf16.vlgmr.msra.gmra.mrb[4].mxu0 %v692_v47 }
 0x107   :  { %v585_v48 = vpop.f32.mrb[0].mxu0 }
 0x108   :  { %v586_v50 = vpop.f32.mrb[1].mxu0 }
 0x109   :  { %v587_v51 = vadd.f32 %v586_v50, %v585_v48  ;;  %v588_v52 = vpop.f32.mrb[2].mxu0  ;;  %v607_v53 = vpop.f32.mrb[0].mxu1 }
 0x10a   :  { %v589_v54 = vpop.f32.mrb[3].mxu0  ;;  %v608_v55 = vpop.f32.mrb[1].mxu1 }
 0x10b   :  { %v413_v56 = vadd.f32 %v587_v51, %v523_v49  ;;  %v609_v57 = vadd.f32 %v608_v55, %v607_v53  ;;  %v610_v58 = vpop.f32.mrb[2].mxu1 }
 0x10c   :  { %v611_v59 = vpop.f32.mrb[3].mxu1 }
 0x10d   :  { %v453_v60 = vadd.f32 %v609_v57, %v413_v56 }
 0x127   :  { %v492_v61 = vpop.f32.mrb[4].mxu0 }
 0x128   :  { %v493_v62 = vadd.f32 %v492_v61, %v453_v60  ;;  %v640_v63 = vpop.f32.mrb[5].mxu0 }
 0x129   :  { %v495_v0 = vpop.f32.mrb[6].mxu0 }
 0x12a   :  { %v641_v1 = vpop.f32.mrb[7].mxu0  ;;  %498 = vmax.xlane.f32.xlu0 %v493_v62 }
 0x1b7   :  { %v499_v2 = vpop.xlane.xlu0 %498 }
 0x1b8   :  { %v500_v3 = vsub.f32 %v493_v62, %v499_v2 }
 0x1ba   :  { %v501_v4 = vmul.f32 1.442695, %v500_v3 }
 0x1bc   :  { %693 = vpow2.f32 %v501_v4 }
 0x1c6   :  { %v694_v5 = vpop.eup %693 }
 0x1c7   :  { %503 = vadd.xlane.f32.xlu0 %v694_v5 }
 0x254   :  { %v504_v6 = vpop.xlane.xlu0 %503 }
 0x255   :  { %695 = vrcp.f32 %v504_v6 }
 0x25f   :  { %v696_v7 = vpop.eup %695 }
 0x260   :  { %v506_v8 = vmul.f32 %v696_v7, %v694_v5 }
 0x262   :  { %507 = vst [vmem:[#allocation5] sm:$0xff] %v506_v8 }
 0x263   :  { %730 = shalt.err (!%p727_p12)
}
 0x264   :  { %s731_s9 = scalar_lea.hbm %s810_s3, 128 }
 0x265   :  { %p732_p13 = scmp.ne.s32.totalorder %s810_s3, %s731_s9  ;;  %p735_p0 = scmp.lt.u32.totalorder %s731_s9, %s810_s3 }
 0x267   :  { %p737_p1 = pnand %p735_p0, %p732_p13 }
 0x269   :  { %740 = shalt.err (!%p737_p1)
}
 0x26a   :  { %517 = dma.vmem_to_hbm [thread:$0]  %s515_s2, 128, %s810_s3, [#allocation4]  }
 0x26b   :  { %743 = dma.done.wait [#allocation4], 128  }
 0x26c   :  { %744 = vsyncadd [#allocation4], 4294967168 }
 0x26d   :  { %521 = vsyncpa [#allocation3], 1 }
 0x26e   :  { %522 = vsyncpa [#allocation4], 1 }

</bundles_post_ra>
